<compile_context>
chip_gen: v5e
topology: v5e:2x2
jax: 0.10.0
libtpu: 0.0.40
codegen_flags: <defaults>
</compile_context>

<pallas_src>
import jax
import jax.numpy as jnp
from jax.experimental import pallas as pl
from jax.experimental.pallas import tpu as pltpu

EPS_BN = 1e-9


def _round_up(x, m):
    return ((x + m - 1) // m) * m


def _pad2(a, rows, cols):
    return jnp.pad(a, ((0, rows - a.shape[0]), (0, cols - a.shape[1])))


def _pad_row(v, cols):
    return jnp.pad(v.reshape(1, -1), ((0, 0), (0, cols - v.shape[0])))


def high_order_aggregator(adj, feat_in, w0, w1, b0, b1, gamma, beta, *, tm=256):
    """adj: (N, N) dense row-normalized adjacency; feat_in: (N, F_in).

    w0/w1 are pre-transposed to (F_in, F_out). Returns (adj, feat_out)."""
    n, f_in = feat_in.shape
    f_out = w0.shape[1]

    # ---- padding / tiling decisions --------------------------------------
    f_in_p = _round_up(f_in, 128)
    f_out_p = _round_up(f_out, 128)
    tm = max(8, min(_round_up(tm, 8), _round_up(n, 8)))
    n_pad = _round_up(n, tm)
    num_tiles = n_pad // tm

    adj_p = _pad2(adj.astype(jnp.float32), n_pad, n_pad)
    x_p = _pad2(feat_in.astype(jnp.float32), n_pad, f_in_p)
    w0_p = _pad2(w0.astype(jnp.float32), f_in_p, f_out_p)
    w1_p = _pad2(w1.astype(jnp.float32), f_in_p, f_out_p)
    b0_p = _pad_row(b0.astype(jnp.float32), f_out_p)
    b1_p = _pad_row(b1.astype(jnp.float32), f_out_p)
    gamma_p = _pad_row(gamma.astype(jnp.float32), f_out_p)
    beta_p = _pad_row(beta.astype(jnp.float32), f_out_p)

    # VMEM budget: double-buffered streamed tiles + resident operands.
    bytes_needed = 4 * (
        2 * tm * n_pad                    # adj tile (double-buffered)
        + 2 * tm * f_in_p                 # X row tile
        + 2 * n_pad * f_in_p              # X resident
        + 2 * 2 * f_in_p * f_out_p        # W0, W1
        + 2 * 4 * f_out_p                 # b0, b1, gamma, beta
        + 2 * tm * f_out_p                # feat / out tile
        + 2 * 2 * f_out_p                 # stats tile (pass 1)
        + 2 * num_tiles * 2 * f_out_p)    # stats resident (pass 2)
    vmem_limit = int(min(max(2 * bytes_needed, 32 * 1024 * 1024),
                         64 * 1024 * 1024))

    # ---------------- pass 1: hops + partial BN statistics ----------------
    def pass1_kernel(adj_ref, xt_ref, xf_ref, w0_ref, w1_ref, b0_ref, b1_ref,
                     feat_ref, stats_ref):
        i = pl.program_id(0)

        # hop-0: X_tile @ W0 + b0, relu
        h0 = jnp.dot(xt_ref[...], w0_ref[...],
                     preferred_element_type=jnp.float32) + b0_ref[...]
        h0 = jnp.maximum(h0, 0.0)

        # hop-1: (A_tile @ X) @ W1 + b1, relu
        ax = jnp.dot(adj_ref[...], xf_ref[...],
                     preferred_element_type=jnp.float32)
        h1 = jnp.dot(ax, w1_ref[...],
                     preferred_element_type=jnp.float32) + b1_ref[...]
        h1 = jnp.maximum(h1, 0.0)

        feat = h0 + h1                      # aggr='mean' -> sum over hops
        feat_ref[...] = feat

        # per-tile partial sums for BatchNorm; mask padded rows (>= real N)
        rows = i * tm + jax.lax.broadcasted_iota(jnp.int32, (tm, 1), 0)
        fm = feat * (rows < n).astype(jnp.float32)
        s1 = jnp.sum(fm, axis=0, keepdims=True)
        s2 = jnp.sum(fm * fm, axis=0, keepdims=True)
        stats_ref[0] = jnp.concatenate([s1, s2], axis=0)

    cost1 = pl.CostEstimate(
        flops=int(2 * n_pad * n_pad * f_in_p + 4 * n_pad * f_in_p * f_out_p),
        transcendentals=0,
        bytes_accessed=int(4 * (n_pad * n_pad + 2 * n_pad * f_in_p
                                + 2 * f_in_p * f_out_p + n_pad * f_out_p
                                + num_tiles * 2 * f_out_p)))

    feat_pre, stats = pl.pallas_call(
        pass1_kernel,
        out_shape=(jax.ShapeDtypeStruct((n_pad, f_out_p), jnp.float32),
                   jax.ShapeDtypeStruct((num_tiles, 2, f_out_p), jnp.float32)),
        grid=(num_tiles,),
        in_specs=[
            pl.BlockSpec((tm, n_pad), lambda i: (i, 0)),             # adj tile
            pl.BlockSpec((tm, f_in_p), lambda i: (i, 0)),            # X row tile
            pl.BlockSpec((n_pad, f_in_p), lambda i: (0, 0)),         # X resident
            pl.BlockSpec((f_in_p, f_out_p), lambda i: (0, 0)),       # W0
            pl.BlockSpec((f_in_p, f_out_p), lambda i: (0, 0)),       # W1
            pl.BlockSpec((1, f_out_p), lambda i: (0, 0)),            # b0
            pl.BlockSpec((1, f_out_p), lambda i: (0, 0)),            # b1
        ],
        out_specs=[
            pl.BlockSpec((tm, f_out_p), lambda i: (i, 0)),           # feat
            pl.BlockSpec((1, 2, f_out_p), lambda i: (i, 0, 0)),      # stats
        ],
        compiler_params=pltpu.CompilerParams(
            dimension_semantics=("parallel",),
            vmem_limit_bytes=vmem_limit),
        cost_estimate=cost1,
    )(adj_p, x_p, x_p, w0_p, w1_p, b0_p, b1_p)

    # ---------------- pass 2: apply BatchNorm ------------------------------
    inv_n = 1.0 / float(n)

    def pass2_kernel(feat_ref, stats_ref, gamma_ref, beta_ref, out_ref):
        totals = jnp.sum(stats_ref[...], axis=0)         # (2, F)
        mean = totals[0:1, :] * inv_n                    # (1, F)
        var = totals[1:2, :] * inv_n - mean * mean       # biased variance
        scale = gamma_ref[...] * jax.lax.rsqrt(var + EPS_BN)
        shift = beta_ref[...] - mean * scale
        out_ref[...] = feat_ref[...] * scale + shift

    cost2 = pl.CostEstimate(
        flops=int(4 * n_pad * f_out_p),
        transcendentals=int(num_tiles * f_out_p),
        bytes_accessed=int(4 * (2 * n_pad * f_out_p
                                + num_tiles * 2 * f_out_p + 2 * f_out_p)))

    out_pad = pl.pallas_call(
        pass2_kernel,
        out_shape=jax.ShapeDtypeStruct((n_pad, f_out_p), jnp.float32),
        grid=(num_tiles,),
        in_specs=[
            pl.BlockSpec((tm, f_out_p), lambda i: (i, 0)),               # feat
            pl.BlockSpec((num_tiles, 2, f_out_p), lambda i: (0, 0, 0)),  # stats
            pl.BlockSpec((1, f_out_p), lambda i: (0, 0)),                # gamma
            pl.BlockSpec((1, f_out_p), lambda i: (0, 0)),                # beta
        ],
        out_specs=pl.BlockSpec((tm, f_out_p), lambda i: (i, 0)),
        compiler_params=pltpu.CompilerParams(
            dimension_semantics=("parallel",),
            vmem_limit_bytes=vmem_limit),
        cost_estimate=cost2,
    )(feat_pre, stats, gamma_p, beta_p)

    return adj, out_pad[:n, :f_out]


def reference(adj, x, w0, w1, b0, b1, gamma, beta):
    h0 = jnp.maximum(x @ w0 + b0, 0.0)
    h1 = jnp.maximum((adj @ x) @ w1 + b1, 0.0)
    s = h0 + h1
    mean = s.mean(axis=0, keepdims=True)
    var = ((s - mean) ** 2).mean(axis=0, keepdims=True)
    return (s - mean) / jnp.sqrt(var + EPS_BN) * gamma + beta


if __name__ == "__main__":
    N, DIM_IN, DIM_OUT = 64, 32, 32
    ORDER = 1

    key = jax.random.PRNGKey(0)
    k_adj, k_x, k_w0, k_w1 = jax.random.split(key, 4)

    # dense row-normalized adjacency (stand-in for the sparse adj_norm)
    adj_raw = (jax.random.uniform(k_adj, (N, N)) < 0.15).astype(jnp.float32)
    adj_raw = adj_raw + jnp.eye(N, dtype=jnp.float32)          # self loops
    adj = adj_raw / jnp.sum(adj_raw, axis=1, keepdims=True)    # row-normalize

    feat_in = jax.random.normal(k_x, (N, DIM_IN), dtype=jnp.float32)

    # Xavier-uniform init for the two hop weights (Linear: (dim_out, dim_in)),
    # stored pre-transposed as (dim_in, dim_out).
    bound = (6.0 / (DIM_IN + DIM_OUT)) ** 0.5
    w0 = jax.random.uniform(k_w0, (DIM_IN, DIM_OUT), jnp.float32, -bound, bound)
    w1 = jax.random.uniform(k_w1, (DIM_IN, DIM_OUT), jnp.float32, -bound, bound)
    b0 = jnp.zeros((DIM_OUT,), jnp.float32)
    b1 = jnp.zeros((DIM_OUT,), jnp.float32)
    gamma = jnp.ones((DIM_OUT,), jnp.float32)   # BatchNorm1d weight init
    beta = jnp.zeros((DIM_OUT,), jnp.float32)   # BatchNorm1d bias init

    adj_out, feat_out = high_order_aggregator(
        adj, feat_in, w0, w1, b0, b1, gamma, beta)
    feat_out = jax.block_until_ready(feat_out)

    ref = reference(adj, feat_in, w0, w1, b0, b1, gamma, beta)
    assert feat_out.shape == (N, DIM_OUT)
    assert jnp.allclose(feat_out, ref, atol=1e-4, rtol=1e-4)

    print("KERNEL_OK")
</pallas_src>

<mosaic_0001>
module attributes {stable_mosaic.version = 11 : i64} {
  func.func @pass1_kernel(%arg0: i32, %arg1: memref<64x64xf32, #tpu.memory_space<vmem>>, %arg2: memref<64x128xf32, #tpu.memory_space<vmem>>, %arg3: memref<64x128xf32, #tpu.memory_space<vmem>>, %arg4: memref<128x128xf32, #tpu.memory_space<vmem>>, %arg5: memref<128x128xf32, #tpu.memory_space<vmem>>, %arg6: memref<1x128xf32, #tpu.memory_space<vmem>>, %arg7: memref<1x128xf32, #tpu.memory_space<vmem>>, %arg8: memref<64x128xf32, #tpu.memory_space<vmem>>, %arg9: memref<1x2x128xf32, #tpu.memory_space<vmem>>) attributes {dimension_semantics = [#tpu.dimension_semantics<parallel>], iteration_bounds = array<i64: 1>, scalar_prefetch = 0 : i64, scratch_operands = 0 : i64, tpu.core_type = #tpu.core_type<tc>, window_params = [{transform_indices = @transform_0, window_bounds = array<i64: 64, 64>}, {transform_indices = @transform_1, window_bounds = array<i64: 64, 128>}, {pipeline_mode = #tpu.pipeline_mode<synchronous>, transform_indices = @transform_2, window_bounds = array<i64: 64, 128>}, {pipeline_mode = #tpu.pipeline_mode<synchronous>, transform_indices = @transform_3, window_bounds = array<i64: 128, 128>}, {pipeline_mode = #tpu.pipeline_mode<synchronous>, transform_indices = @transform_4, window_bounds = array<i64: 128, 128>}, {pipeline_mode = #tpu.pipeline_mode<synchronous>, transform_indices = @transform_5, window_bounds = array<i64: 1, 128>}, {pipeline_mode = #tpu.pipeline_mode<synchronous>, transform_indices = @transform_6, window_bounds = array<i64: 1, 128>}, {transform_indices = @transform_7, window_bounds = array<i64: 64, 128>}, {transform_indices = @transform_8, window_bounds = array<i64: 1, 2, 128>}]} {
    %c0 = arith.constant 0 : index
    %c0_0 = arith.constant 0 : index
    %0 = vector.load %arg2[%c0, %c0_0] : memref<64x128xf32, #tpu.memory_space<vmem>>, vector<64x128xf32>
    %c0_1 = arith.constant 0 : index
    %c0_2 = arith.constant 0 : index
    %1 = vector.load %arg4[%c0_1, %c0_2] : memref<128x128xf32, #tpu.memory_space<vmem>>, vector<128x128xf32>
    %cst = arith.constant dense<0.000000e+00> : vector<64x128xf32>
    %2 = tpu.matmul %0, %1, %cst {dimension_numbers = #tpu.dot_dimension_numbers<[1], [0], [0], [1], [0, 0, 1, 1], [], []>} : vector<64x128xf32>, vector<128x128xf32>, vector<64x128xf32> -> vector<64x128xf32>
    %c0_3 = arith.constant 0 : index
    %c0_4 = arith.constant 0 : index
    %3 = vector.load %arg6[%c0_3, %c0_4] : memref<1x128xf32, #tpu.memory_space<vmem>>, vector<1x128xf32>
    %4 = vector.broadcast %3 : vector<1x128xf32> to vector<64x128xf32>
    %5 = arith.addf %2, %4 : vector<64x128xf32>
    %cst_5 = arith.constant 0.000000e+00 : f32
    %6 = vector.broadcast %cst_5 : f32 to vector<64x128xf32>
    %7 = arith.maximumf %5, %6 : vector<64x128xf32>
    %c0_6 = arith.constant 0 : index
    %c0_7 = arith.constant 0 : index
    %8 = vector.load %arg1[%c0_6, %c0_7] : memref<64x64xf32, #tpu.memory_space<vmem>>, vector<64x64xf32>
    %c0_8 = arith.constant 0 : index
    %c0_9 = arith.constant 0 : index
    %9 = vector.load %arg3[%c0_8, %c0_9] : memref<64x128xf32, #tpu.memory_space<vmem>>, vector<64x128xf32>
    %cst_10 = arith.constant dense<0.000000e+00> : vector<64x128xf32>
    %10 = tpu.matmul %8, %9, %cst_10 {dimension_numbers = #tpu.dot_dimension_numbers<[1], [0], [0], [1], [0, 0, 1, 1], [], []>} : vector<64x64xf32>, vector<64x128xf32>, vector<64x128xf32> -> vector<64x128xf32>
    %c0_11 = arith.constant 0 : index
    %c0_12 = arith.constant 0 : index
    %11 = vector.load %arg5[%c0_11, %c0_12] : memref<128x128xf32, #tpu.memory_space<vmem>>, vector<128x128xf32>
    %cst_13 = arith.constant dense<0.000000e+00> : vector<64x128xf32>
    %12 = tpu.matmul %10, %11, %cst_13 {dimension_numbers = #tpu.dot_dimension_numbers<[1], [0], [0], [1], [0, 0, 1, 1], [], []>} : vector<64x128xf32>, vector<128x128xf32>, vector<64x128xf32> -> vector<64x128xf32>
    %c0_14 = arith.constant 0 : index
    %c0_15 = arith.constant 0 : index
    %13 = vector.load %arg7[%c0_14, %c0_15] : memref<1x128xf32, #tpu.memory_space<vmem>>, vector<1x128xf32>
    %14 = vector.broadcast %13 : vector<1x128xf32> to vector<64x128xf32>
    %15 = arith.addf %12, %14 : vector<64x128xf32>
    %cst_16 = arith.constant 0.000000e+00 : f32
    %16 = vector.broadcast %cst_16 : f32 to vector<64x128xf32>
    %17 = arith.maximumf %15, %16 : vector<64x128xf32>
    %18 = arith.addf %7, %17 : vector<64x128xf32>
    %c0_17 = arith.constant 0 : index
    %c0_18 = arith.constant 0 : index
    %19 = vector.load %arg8[%c0_17, %c0_18] : memref<64x128xf32, #tpu.memory_space<vmem>>, vector<64x128xf32>
    tpu.vector_store %arg8[%c0_17, %c0_18], %18 {strides = array<i32>} : memref<64x128xf32, #tpu.memory_space<vmem>>, vector<64x128xf32>,
    %c64_i32 = arith.constant 64 : i32
    %20 = arith.muli %arg0, %c64_i32 : i32
    %21 = tpu.iota {dimensions = array<i32: 0>} : vector<64x1xi32>
    %22 = vector.broadcast %20 : i32 to vector<64x1xi32>
    %23 = arith.addi %22, %21 : vector<64x1xi32>
    %c64_i32_19 = arith.constant 64 : i32
    %24 = vector.broadcast %c64_i32_19 : i32 to vector<64x1xi32>
    %25 = arith.cmpi slt, %23, %24 : vector<64x1xi32>
    %26 = arith.extui %25 : vector<64x1xi1> to vector<64x1xi32>
    %27 = arith.sitofp %26 : vector<64x1xi32> to vector<64x1xf32>
    %28 = vector.broadcast %27 : vector<64x1xf32> to vector<64x128xf32>
    %29 = arith.mulf %18, %28 : vector<64x128xf32>
    %cst_20 = arith.constant dense<0.000000e+00> : vector<128xf32>
    %30 = vector.multi_reduction <add>, %29, %cst_20 [0] : vector<64x128xf32> to vector<128xf32>
    %31 = vector.shape_cast %30 : vector<128xf32> to vector<1x128xf32>
    %32 = arith.mulf %29, %29 : vector<64x128xf32>
    %cst_21 = arith.constant dense<0.000000e+00> : vector<128xf32>
    %33 = vector.multi_reduction <add>, %32, %cst_21 [0] : vector<64x128xf32> to vector<128xf32>
    %34 = vector.shape_cast %33 : vector<128xf32> to vector<1x128xf32>
    %35 = tpu.concatenate %31, %34 in 0 : vector<1x128xf32>, vector<1x128xf32> -> vector<2x128xf32>
    %c0_22 = arith.constant 0 : index
    %c0_23 = arith.constant 0 : index
    %c0_24 = arith.constant 0 : index
    %36 = vector.load %arg9[%c0_22, %c0_23, %c0_24] : memref<1x2x128xf32, #tpu.memory_space<vmem>>, vector<1x2x128xf32>
    %37 = vector.shape_cast %36 : vector<1x2x128xf32> to vector<2x128xf32>
    %38 = vector.shape_cast %35 : vector<2x128xf32> to vector<1x2x128xf32>
    tpu.vector_store %arg9[%c0_22, %c0_23, %c0_24], %38 {strides = array<i32>} : memref<1x2x128xf32, #tpu.memory_space<vmem>>, vector<1x2x128xf32>,
    return
  }
  func.func @transform_0(%arg0: i32) -> (i32, i32) {
    %c0_i32 = arith.constant 0 : i32
    %c0_i32_0 = arith.constant 0 : i32
    return %arg0, %c0_i32 : i32, i32
  }
  func.func @transform_1(%arg0: i32) -> (i32, i32) {
    %c0_i32 = arith.constant 0 : i32
    %c0_i32_0 = arith.constant 0 : i32
    return %arg0, %c0_i32 : i32, i32
  }
  func.func @transform_2(%arg0: i32) -> (i32, i32) {
    %c0_i32 = arith.constant 0 : i32
    %c0_i32_0 = arith.constant 0 : i32
    %c0_i32_1 = arith.constant 0 : i32
    return %c0_i32, %c0_i32_0 : i32, i32
  }
  func.func @transform_3(%arg0: i32) -> (i32, i32) {
    %c0_i32 = arith.constant 0 : i32
    %c0_i32_0 = arith.constant 0 : i32
    %c0_i32_1 = arith.constant 0 : i32
    return %c0_i32, %c0_i32_0 : i32, i32
  }
  func.func @transform_4(%arg0: i32) -> (i32, i32) {
    %c0_i32 = arith.constant 0 : i32
    %c0_i32_0 = arith.constant 0 : i32
    %c0_i32_1 = arith.constant 0 : i32
    return %c0_i32, %c0_i32_0 : i32, i32
  }
  func.func @transform_5(%arg0: i32) -> (i32, i32) {
    %c0_i32 = arith.constant 0 : i32
    %c0_i32_0 = arith.constant 0 : i32
    %c0_i32_1 = arith.constant 0 : i32
    return %c0_i32, %c0_i32_0 : i32, i32
  }
  func.func @transform_6(%arg0: i32) -> (i32, i32) {
    %c0_i32 = arith.constant 0 : i32
    %c0_i32_0 = arith.constant 0 : i32
    %c0_i32_1 = arith.constant 0 : i32
    return %c0_i32, %c0_i32_0 : i32, i32
  }
  func.func @transform_7(%arg0: i32) -> (i32, i32) {
    %c0_i32 = arith.constant 0 : i32
    %c0_i32_0 = arith.constant 0 : i32
    return %arg0, %c0_i32 : i32, i32
  }
  func.func @transform_8(%arg0: i32) -> (i32, i32, i32) {
    %c0_i32 = arith.constant 0 : i32
    %c0_i32_0 = arith.constant 0 : i32
    %c0_i32_1 = arith.constant 0 : i32
    return %arg0, %c0_i32, %c0_i32_0 : i32, i32, i32
  }
}

</mosaic_0001>

<bundles_post_ra>
// kernel: tpu_custom_call.1
= control target key start
LH: loop header
LB: loop body
LE: loop exit
PB: predicated region body
PF: predicated region fallthrough
CT: control target
= control target key end

     0   :  { %14 = vsyncpa [#allocation3], 0  ;;  %s869_s0 = inlined_call_operand.hbm [shape: f32[64,64], index: 0, kind: input, shape index: {}]   ;;  %s870_s1 = inlined_call_operand.hbm [shape: f32[64,128], index: 1, kind: input, shape index: {}]   ;;  %s871_s2 = inlined_call_operand.hbm [shape: f32[64,128], index: 2, kind: input, shape index: {}]   ;;  %s872_s3 = inlined_call_operand.hbm [shape: f32[128,128], index: 3, kind: input, shape index: {}]   ;;  %s873_s4 = inlined_call_operand.hbm [shape: f32[128,128], index: 4, kind: input, shape index: {}]   ;;  %s874_s5 = inlined_call_operand.vmem [shape: f32[1,128], index: 5, kind: input, shape index: {}]   ;;  %s875_s6 = inlined_call_operand.vmem [shape: f32[1,128], index: 6, kind: input, shape index: {}]   ;;  %s876_s7 = inlined_call_operand.hbm [shape: f32[64,128], index: 7, kind: output, shape index: {0}]   ;;  %s877_s8 = inlined_call_operand.hbm [shape: f32[1,2,128], index: 8, kind: output, shape index: {1}]  }
   0x1   :  { %15 = vsyncpa [#allocation6], 0 }
   0x2   :  { %16 = vsyncpa [#allocation9], 0 }
   0x3   :  { %17 = vsyncpa [#allocation4], 0 }
   0x4   :  { %18 = vsyncpa [#allocation13], 0  ;;  %s36_s29 = sshll.u32 %s870_s1, 4  ;;  %s706_s30 = smov [#allocation5]   ;;  %s37_s29 = int_to_ptr.hbm [resolvable:$true] %s36_s29 }
   0x5   :  { %s38_s9 = sshll.u32 %s706_s30, 4  ;;  %s62_s12 = sshll.u32 %s872_s3, 4  ;;  %s39_s9 = int_to_ptr.vmem [resolvable:$true] %s38_s9  ;;  %s63_s12 = int_to_ptr.hbm [resolvable:$true] %s62_s12 }
   0x6   :  { %s707_s13 = smov 128   ;;  %s708_s14 = smov 8  }
   0x7   :  { %44 = dma.hbm_to_vmem [thread:$0]  %s37_s29, 1024, %s39_s9, [#allocation6], %s707_s13, %s707_s13, %s708_s14  }
   0x8   :  { %s709_s15 = smov [#allocation8]   ;;  %s23_s1 = sshll.u32 %s869_s0, 4  ;;  %s24_s1 = int_to_ptr.hbm [resolvable:$true] %s23_s1 }
   0x9   :  { %s64_s16 = sshll.u32 %s709_s15, 4  ;;  %s49_s20 = sshll.u32 %s871_s2, 4  ;;  %s65_s16 = int_to_ptr.vmem [resolvable:$true] %s64_s16  ;;  %s50_s20 = int_to_ptr.hbm [resolvable:$true] %s49_s20 }
   0xa   :  { %70 = dma.hbm_to_vmem [thread:$0]  %s63_s12, 2048, %s65_s16, [#allocation9], %s707_s13, %s707_s13, %s708_s14  }
   0xb   :  { %s710_s21 = smov [#allocation2]   ;;  %s711_s23 = smov [#allocation7]  }
   0xc   :  { %s25_s22 = sshll.u32 %s710_s21, 4  ;;  %s51_s0 = sshll.u32 %s711_s23, 4  ;;  %s26_s22 = int_to_ptr.vmem [resolvable:$true] %s25_s22  ;;  %s52_s0 = int_to_ptr.vmem [resolvable:$true] %s51_s0 }
   0xd   :  { %31 = dma.hbm_to_vmem [thread:$0]  %s24_s1, 1024, %s26_s22, [#allocation3], %s707_s13, %s707_s13, %s708_s14  }
   0xe   :  { %s75_s26 = sshll.u32 %s873_s4, 4  ;;  %s712_s2 = smov [#allocation10]   ;;  %s76_s26 = int_to_ptr.hbm [resolvable:$true] %s75_s26 }
   0xf   :  { %57 = dma.hbm_to_vmem [thread:$0]  %s50_s20, 1024, %s52_s0, [#allocation6], %s707_s13, %s707_s13, %s708_s14  }
  0x10   :  { %s77_s27 = sshll.u32 %s712_s2, 4  ;;  %s78_s27 = int_to_ptr.vmem [resolvable:$true] %s77_s27 }
  0x11   :  { %83 = dma.hbm_to_vmem [thread:$0]  %s76_s26, 2048, %s78_s27, [#allocation9], %s707_s13, %s707_s13, %s708_s14  }
  0x12   :  { %696 = dma.done.wait [#allocation3], 1024  }
  0x13   :  { %697 = vsyncadd [#allocation3], 4294966272 }
  0x14   :  { %698 = dma.done.wait [#allocation6], 2048  }
  0x15   :  { %699 = vsyncadd [#allocation6], 4294965248 }
  0x16   :  { %700 = dma.done.wait [#allocation9], 4096  }
  0x17   :  { %701 = vsyncadd [#allocation9], 4294963200  ;;  %v200_v0 = vld [vmem:[#allocation7 + $0x38] sm:$0xff]  ;;  %v199_v1 = vld [vmem:[#allocation7 + $0x30] sm:$0xff]  ;;  %vm201_vm0 = vcmask 523264   ;;  %s446_s11 = sshll.u32 %s876_s7, 4  ;;  %s447_s11 = int_to_ptr.hbm [resolvable:$true] %s446_s11 }
  0x18   :  { %234 = vmatpush.msra.mxu1 %v200_v0  ;;  %v198_v2 = vld [vmem:[#allocation7 + $0x28] sm:$0xff]  ;;  %v197_v3 = vld [vmem:[#allocation7 + $0x20] sm:$0xff]  ;;  %v196_v4 = vld [vmem:[#allocation7 + $0x18] sm:$0xff]  ;;  %s714_s7 = smov [#allocation12]   ;;  %s460_s17 = sshll.u32 %s877_s8, 4  ;;  %vm437_vm1 = vcmask 1040384   ;;  %s461_s17 = int_to_ptr.hbm [resolvable:$true] %s460_s17 }
  0x19   :  { %v195_v5 = vld [vmem:[#allocation7 + $0x10] sm:$0xff]  ;;  %v194_v6 = vld [vmem:[#allocation7 + $0x8] sm:$0xff]  ;;  %v193_v7 = vld [vmem:[#allocation7] sm:$0xff]  ;;  %s458_s12 = sshll.u32 %s714_s7, 4  ;;  %s459_s12 = int_to_ptr.vmem [resolvable:$true] %s458_s12 }
  0x1a   :  { %235 = vmatpush.msra.mxu1 %v199_v1  ;;  %v185_v8 = vld [vmem:[#allocation2] sm:$0xff]  ;;  %v186_v9 = vld [vmem:[#allocation2 + $0x8] sm:$0xff]  ;;  %v187_v10 = vld [vmem:[#allocation2 + $0x10] sm:$0xff] }
  0x1b   :  { %v188_v11 = vld [vmem:[#allocation2 + $0x18] sm:$0xff]  ;;  %v796_v13 = vld [vmem:[#allocation10 + $0x70] sm:$0xff]  ;;  %v799_v16 = vld [vmem:[#allocation10 + $0x68] sm:$0xff] }
  0x1c   :  { %236 = vmatpush.msra.mxu1 %v198_v2  ;;  %v794_v12 = vld [vmem:[#allocation10 + $0x78] sm:$0xff]  ;;  %v130_v15 = vld [vmem:[#allocation8 + $0x70] sm:$0xff]  ;;  %v129_v17 = vld [vmem:[#allocation8 + $0x68] sm:$0xff] }
  0x1d   :  { %287 = vmatpush.msra.mxu2 %v794_v12  ;;  %v131_v14 = vld [vmem:[#allocation8 + $0x78] sm:$0xff]  ;;  %v802_v18 = vld [vmem:[#allocation10 + $0x60] sm:$0xff]  ;;  %v809_v23 = vld [vmem:[#allocation10 + $0x50] sm:$0xff] }
  0x1e   :  { %237 = vmatpush.msra.mxu1 %v197_v3  ;;  %136 = vmatpush.msra.mxu0 %v131_v14  ;;  %v189_v19 = vld [vmem:[#allocation2 + $0x20] sm:$0xff]  ;;  %v805_v21 = vld [vmem:[#allocation10 + $0x58] sm:$0xff]  ;;  %v126_v24 = vld [vmem:[#allocation8 + $0x50] sm:$0xff] }
  0x1f   :  { %485 = vmatpush.msra.mxu3 %v131_v14  ;;  %288 = vmatpush.msra.mxu2 %v796_v13  ;;  %v128_v20 = vld [vmem:[#allocation8 + $0x60] sm:$0xff]  ;;  %v127_v22 = vld [vmem:[#allocation8 + $0x58] sm:$0xff]  ;;  %v812_v25 = vld [vmem:[#allocation10 + $0x48] sm:$0xff] }
  0x20   :  { %238 = vmatpush.msra.mxu1 %v196_v4  ;;  %137 = vmatpush.msra.mxu0 %v130_v15  ;;  %v125_v26 = vld [vmem:[#allocation8 + $0x48] sm:$0xff]  ;;  %v815_v27 = vld [vmem:[#allocation10 + $0x40] sm:$0xff]  ;;  %v818_v30 = vld [vmem:[#allocation10 + $0x38] sm:$0xff] }
  0x21   :  { %486 = vmatpush.msra.mxu3 %v130_v15  ;;  %289 = vmatpush.msra.mxu2 %v799_v16  ;;  %v190_v28 = vld [vmem:[#allocation2 + $0x28] sm:$0xff]  ;;  %v124_v29 = vld [vmem:[#allocation8 + $0x40] sm:$0xff]  ;;  %v123_v31 = vld [vmem:[#allocation8 + $0x38] sm:$0xff] }
  0x22   :  { %239 = vmatpush.msra.mxu1 %v195_v5  ;;  %138 = vmatpush.msra.mxu0 %v129_v17  ;;  %v273_v32 = vld [vmem:[#allocation10 + $0x30] sm:$0xff]  ;;  %v272_v34 = vld [vmem:[#allocation10 + $0x28] sm:$0xff]  ;;  %v271_v36 = vld [vmem:[#allocation10 + $0x20] sm:$0xff] }
  0x23   :  { %487 = vmatpush.msra.mxu3 %v129_v17  ;;  %290 = vmatpush.msra.mxu2 %v802_v18  ;;  %v122_v33 = vld [vmem:[#allocation8 + $0x30] sm:$0xff]  ;;  %v121_v35 = vld [vmem:[#allocation8 + $0x28] sm:$0xff]  ;;  %v120_v38 = vld [vmem:[#allocation8 + $0x20] sm:$0xff] }
  0x24   :  { %240 = vmatpush.msra.mxu1 %v194_v6  ;;  %139 = vmatpush.msra.mxu0 %v128_v20  ;;  %v191_v37 = vld [vmem:[#allocation2 + $0x30] sm:$0xff]  ;;  %v270_v39 = vld [vmem:[#allocation10 + $0x18] sm:$0xff]  ;;  %v268_v42 = vld [vmem:[#allocation10 + $0x8] sm:$0xff] }
  0x25   :  { %291 = vmatpush.msra.mxu2 %v805_v21  ;;  %488 = vmatpush.msra.mxu3 %v128_v20  ;;  %v119_v40 = vld [vmem:[#allocation8 + $0x18] sm:$0xff]  ;;  %v269_v41 = vld [vmem:[#allocation10 + $0x10] sm:$0xff]  ;;  %v267_v44 = vld [vmem:[#allocation10] sm:$0xff] }
  0x26   :  { %241 = vmatpush.msra.mxu1 %v193_v7  ;;  %140 = vmatpush.msra.mxu0 %v127_v22  ;;  %v192_v43 = vld [vmem:[#allocation2 + $0x38] sm:$0xff]  ;;  %v118_v45 = vld [vmem:[#allocation8 + $0x10] sm:$0xff]  ;;  %v117_v46 = vld [vmem:[#allocation8 + $0x8] sm:$0xff] }
  0x27   :  { %477 = vmatmul.msk.f32.vlgmr.msra.gmra.mxu1 %vm201_vm0, %v185_v8  ;;  %292 = vmatpush.msra.mxu2 %v809_v23  ;;  %v116_v47 = vld [vmem:[#allocation8] sm:$0xff]  ;;  %v109_v49 = vld [vmem:[#allocation5 + $0x8] sm:$0xff]  ;;  %v110_v50 = vld [vmem:[#allocation5 + $0x10] sm:$0xff] }
  0x28   :  { %489 = vmatpush.msra.mxu3 %v127_v22  ;;  %141 = vmatpush.msra.mxu0 %v126_v24  ;;  %v108_v48 = vld [vmem:[#allocation5] sm:$0xff]  ;;  %v111_v51 = vld [vmem:[#allocation5 + $0x18] sm:$0xff]  ;;  %v114_v53 = vld [vmem:[#allocation5 + $0x30] sm:$0xff] }
  0x29   :  { %293 = vmatpush.msra.mxu2 %v812_v25  ;;  %v112_v54 = vld [vmem:[#allocation5 + $0x20] sm:$0xff]  ;;  %v115_v56 = vld [vmem:[#allocation5 + $0x38] sm:$0xff]  ;;  %v113_v57 = vld [vmem:[#allocation5 + $0x28] sm:$0xff] }
  0x2a   :  { %490 = vmatpush.msra.mxu3 %v126_v24  ;;  %142 = vmatpush.msra.mxu0 %v125_v26  ;;  %v837_v1 = vld [vmem:[%s874_s5] ss:$0 sm:$0xff]  ;;  %s713_s5 = smov [#allocation11]  }
  0x2b   :  { %294 = vmatpush.msra.mxu2 %v815_v27  ;;  %v843_v4 = vld [vmem:[%s875_s6] ss:$0 sm:$0xff]  ;;  %s444_s6 = sshll.u32 %s713_s5, 4  ;;  %s445_s6 = int_to_ptr.vmem [resolvable:$true] %s444_s6 }
  0x2c   :  { %491 = vmatpush.msra.mxu3 %v125_v26  ;;  %143 = vmatpush.msra.mxu0 %v124_v29 }
  0x2d   :  { %295 = vmatpush.msra.mxu2 %v818_v30 }
  0x2e   :  { %492 = vmatpush.msra.mxu3 %v124_v29  ;;  %144 = vmatpush.msra.mxu0 %v123_v31 }
  0x2f   :  { %478 = vmatmul.msk.f32.gmra.mxu1 %vm201_vm0, %v186_v9  ;;  %296 = vmatpush.msra.mxu2 %v273_v32 }
  0x30   :  { %493 = vmatpush.msra.mxu3 %v123_v31  ;;  %145 = vmatpush.msra.mxu0 %v122_v33 }
  0x31   :  { %297 = vmatpush.msra.mxu2 %v272_v34 }
  0x32   :  { %494 = vmatpush.msra.mxu3 %v122_v33  ;;  %146 = vmatpush.msra.mxu0 %v121_v35 }
  0x33   :  { %298 = vmatpush.msra.mxu2 %v271_v36 }
  0x34   :  { %495 = vmatpush.msra.mxu3 %v121_v35  ;;  %147 = vmatpush.msra.mxu0 %v120_v38 }
  0x35   :  { %299 = vmatpush.msra.mxu2 %v270_v39 }
  0x36   :  { %496 = vmatpush.msra.mxu3 %v120_v38  ;;  %148 = vmatpush.msra.mxu0 %v119_v40 }
  0x37   :  { %479 = vmatmul.msk.f32.gmra.mxu1 %vm201_vm0, %v187_v10  ;;  %300 = vmatpush.msra.mxu2 %v269_v41 }
  0x38   :  { %497 = vmatpush.msra.mxu3 %v119_v40  ;;  %149 = vmatpush.msra.mxu0 %v118_v45 }
  0x39   :  { %301 = vmatpush.msra.mxu2 %v268_v42 }
  0x3a   :  { %498 = vmatpush.msra.mxu3 %v118_v45  ;;  %150 = vmatpush.msra.mxu0 %v117_v46 }
  0x3b   :  { %302 = vmatpush.msra.mxu2 %v267_v44 }
  0x3c   :  { %499 = vmatpush.msra.mxu3 %v117_v46  ;;  %151 = vmatpush.msra.mxu0 %v116_v47 }
  0x3d   :  { %152 = vmatmul.f32.vlgmr.msra.gmra.mxu0 %v108_v48 }
  0x3e   :  { %500 = vmatpush.msra.mxu3 %v116_v47 }
  0x3f   :  { %480 = vmatmul.msk.f32.gmra.mxu1 %vm201_vm0, %v188_v11  ;;  %170 = vmatmul.f32.vlgmr.msra.gmra.mxu3 %v114_v53 }
  0x40   :  { %501 = vmatpush.msrb.mxu3 %v794_v12 }
  0x42   :  { %502 = vmatpush.msrb.mxu3 %v796_v13 }
  0x44   :  { %503 = vmatpush.msrb.mxu3 %v799_v16 }
  0x45   :  { %155 = vmatmul.f32.gmra.mxu0 %v109_v49 }
  0x46   :  { %504 = vmatpush.msrb.mxu3 %v802_v18 }
  0x47   :  { %481 = vmatmul.msk.f32.gmra.mxu1 %vm201_vm0, %v189_v19  ;;  %173 = vmatmul.f32.gmra.mxu3 %v115_v56 }
  0x48   :  { %505 = vmatpush.msrb.mxu3 %v805_v21 }
  0x4a   :  { %506 = vmatpush.msrb.mxu3 %v809_v23 }
  0x4c   :  { %507 = vmatpush.msrb.mxu3 %v812_v25 }
  0x4d   :  { %158 = vmatmul.f32.gmra.mxu0 %v110_v50 }
  0x4e   :  { %508 = vmatpush.msrb.mxu3 %v815_v27 }
  0x4f   :  { %482 = vmatmul.msk.f32.gmra.mxu1 %vm201_vm0, %v190_v28 }
  0x50   :  { %509 = vmatpush.msrb.mxu3 %v818_v30 }
  0x52   :  { %510 = vmatpush.msrb.mxu3 %v273_v32 }
  0x54   :  { %511 = vmatpush.msrb.mxu3 %v272_v34 }
  0x55   :  { %161 = vmatmul.f32.gmra.mxu0 %v111_v51 }
  0x56   :  { %512 = vmatpush.msrb.mxu3 %v271_v36 }
  0x57   :  { %483 = vmatmul.msk.f32.gmra.mxu1 %vm201_vm0, %v191_v37 }
  0x58   :  { %513 = vmatpush.msrb.mxu3 %v270_v39 }
  0x5a   :  { %514 = vmatpush.msrb.mxu3 %v269_v41 }
  0x5c   :  { %515 = vmatpush.msrb.mxu3 %v268_v42 }
  0x5d   :  { %164 = vmatmul.f32.gmra.mxu0 %v112_v54 }
  0x5e   :  { %516 = vmatpush.msrb.mxu3 %v267_v44 }
  0x5f   :  { %484 = vmatmul.msk.f32.gmra.mxu1 %vm201_vm0, %v192_v43 }
  0x65   :  { %167 = vmatmul.f32.gmra.mxu0 %v113_v57 }
  0xa4   :  { %v243_v52 = vpop.f32.mrf.mxu1 }
  0xa5   :  { %303 = vmatmul.f32.vlgmr.msra.gmra.mxu2 %v243_v52 }
  0xac   :  { %v246_v55 = vpop.f32.mrf.mxu1 }
  0xad   :  { %306 = vmatmul.f32.gmra.mxu2 %v246_v55 }
  0xb4   :  { %v249_v58 = vpop.f32.mrf.mxu1 }
  0xb5   :  { %309 = vmatmul.f32.gmra.mxu2 %v249_v58 }
  0xba   :  { %v153_v0 = vpop.f32.mrf.mxu0 }
  0xbb   :  { %v154_v3 = vadd.f32 %v837_v1, %v153_v0 }
  0xbc   :  { %v252_v59 = vpop.f32.mrf.mxu1 }
  0xbd   :  { %312 = vmatmul.f32.gmra.mxu2 %v252_v59  ;;  %v177_v6 = vmax.f32 %v154_v3, 0.0 }
  0xc2   :  { %v156_v2 = vpop.f32.mrf.mxu0  ;;  %v171_v30 = vpop.f32.mrf.mxu3 }
  0xc3   :  { %v157_v11 = vadd.f32 %v837_v1, %v156_v2  ;;  %v172_v46 = vadd.f32 %v837_v1, %v171_v30 }
  0xc4   :  { %v255_v60 = vpop.f32.mrf.mxu1 }
  0xc5   :  { %315 = vmatmul.f32.gmra.mxu2 %v255_v60  ;;  %v178_v13 = vmax.f32 %v157_v11, 0.0  ;;  %v183_v50 = vmax.f32 %v172_v46, 0.0 }
  0xca   :  { %v159_v9 = vpop.f32.mrf.mxu0  ;;  %v174_v40 = vpop.f32.mrf.mxu3 }
  0xcb   :  { %v160_v17 = vadd.f32 %v837_v1, %v159_v9  ;;  %v175_v59 = vadd.f32 %v837_v1, %v174_v40 }
  0xcc   :  { %v258_v61 = vpop.f32.mrf.mxu1 }
  0xcd   :  { %318 = vmatmul.f32.gmra.mxu2 %v258_v61  ;;  %v179_v20 = vmax.f32 %v160_v17, 0.0 }
  0xd2   :  { %v162_v18 = vpop.f32.mrf.mxu0 }
  0xd3   :  { %v163_v24 = vadd.f32 %v837_v1, %v162_v18 }
  0xd4   :  { %v261_v62 = vpop.f32.mrf.mxu1 }
  0xd5   :  { %321 = vmatmul.f32.vlgmr.msrb.gmra.mxu3 %v261_v62  ;;  %v180_v27 = vmax.f32 %v163_v24, 0.0 }
  0xda   :  { %v165_v26 = vpop.f32.mrf.mxu0 }
  0xdb   :  { %v166_v32 = vadd.f32 %v837_v1, %v165_v26 }
  0xdc   :  { %v264_v63 = vpop.f32.mrf.mxu1 }
  0xdd   :  { %324 = vmatmul.f32.gmra.mxu3 %v264_v63  ;;  %v181_v34 = vmax.f32 %v166_v32, 0.0 }
  0xe2   :  { %v168_v36 = vpop.f32.mrf.mxu0 }
  0xe3   :  { %v169_v39 = vadd.f32 %v837_v1, %v168_v36 }
  0xe5   :  { %v182_v42 = vmax.f32 %v169_v39, 0.0 }
 0x128   :  { %v304_v5 = vpop.f32.mrf.mxu2 }
 0x129   :  { %v305_v7 = vadd.f32 %v843_v4, %v304_v5 }
 0x12b   :  { %v328_v8 = vmax.f32 %v305_v7, 0.0 }
 0x12d   :  { %v336_v10 = vadd.f32 %v328_v8, %v177_v6  ;;  %v184_v6 = vmax.f32 %v175_v59, 0.0 }
 0x12f   :  { %344 = vst [vmem:[#allocation11] sm:$0xff] %v336_v10  ;;  %v416_v51 = vmul.f32 %v336_v10, %v336_v10 }
 0x130   :  { %v307_v12 = vpop.f32.mrf.mxu2 }
 0x131   :  { %v308_v14 = vadd.f32 %v843_v4, %v307_v12 }
 0x133   :  { %v329_v15 = vmax.f32 %v308_v14, 0.0 }
 0x135   :  { %v337_v16 = vadd.f32 %v329_v15, %v178_v13 }
 0x137   :  { %345 = vst [vmem:[#allocation11 + $0x8] sm:$0xff] %v337_v16  ;;  %v417_v48 = vmul.f32 %v337_v16, %v337_v16  ;;  %v403_v52 = vadd.f32 %v337_v16, %v336_v10 }
 0x138   :  { %v310_v19 = vpop.f32.mrf.mxu2 }
 0x139   :  { %v311_v21 = vadd.f32 %v843_v4, %v310_v19  ;;  %v424_v55 = vadd.f32 %v417_v48, %v416_v51 }
 0x13b   :  { %v330_v22 = vmax.f32 %v311_v21, 0.0 }
 0x13d   :  { %v338_v23 = vadd.f32 %v330_v22, %v179_v20 }
 0x13f   :  { %346 = vst [vmem:[#allocation11 + $0x10] sm:$0xff] %v338_v23  ;;  %v418_v53 = vmul.f32 %v338_v23, %v338_v23  ;;  %v404_v56 = vadd.f32 %v403_v52, %v338_v23 }
 0x140   :  { %v313_v25 = vpop.f32.mrf.mxu2 }
 0x141   :  { %v314_v28 = vadd.f32 %v843_v4, %v313_v25  ;;  %v425_v60 = vadd.f32 %v424_v55, %v418_v53 }
 0x143   :  { %v331_v29 = vmax.f32 %v314_v28, 0.0 }
 0x145   :  { %v339_v31 = vadd.f32 %v331_v29, %v180_v27 }
 0x147   :  { %347 = vst [vmem:[#allocation11 + $0x18] sm:$0xff] %v339_v31  ;;  %v419_v57 = vmul.f32 %v339_v31, %v339_v31  ;;  %v405_v61 = vadd.f32 %v404_v56, %v339_v31 }
 0x148   :  { %v316_v33 = vpop.f32.mrf.mxu2 }
 0x149   :  { %v317_v35 = vadd.f32 %v843_v4, %v316_v33  ;;  %v426_v0 = vadd.f32 %v425_v60, %v419_v57 }
 0x14b   :  { %v332_v37 = vmax.f32 %v317_v35, 0.0 }
 0x14d   :  { %v340_v38 = vadd.f32 %v332_v37, %v181_v34 }
 0x14f   :  { %348 = vst [vmem:[#allocation11 + $0x20] sm:$0xff] %v340_v38  ;;  %v420_v62 = vmul.f32 %v340_v38, %v340_v38  ;;  %v406_v2 = vadd.f32 %v405_v61, %v340_v38 }
 0x150   :  { %v319_v41 = vpop.f32.mrf.mxu2 }
 0x151   :  { %v320_v43 = vadd.f32 %v843_v4, %v319_v41  ;;  %v427_v7 = vadd.f32 %v426_v0, %v420_v62 }
 0x153   :  { %v333_v44 = vmax.f32 %v320_v43, 0.0 }
 0x155   :  { %v341_v45 = vadd.f32 %v333_v44, %v182_v42 }
 0x157   :  { %349 = vst [vmem:[#allocation11 + $0x28] sm:$0xff] %v341_v45  ;;  %v421_v3 = vmul.f32 %v341_v45, %v341_v45  ;;  %v407_v8 = vadd.f32 %v406_v2, %v341_v45 }
 0x158   :  { %v322_v47 = vpop.f32.mrf.mxu3 }
 0x159   :  { %v323_v49 = vadd.f32 %v843_v4, %v322_v47  ;;  %v428_v10 = vadd.f32 %v427_v7, %v421_v3 }
 0x15b   :  { %v334_v54 = vmax.f32 %v323_v49, 0.0 }
 0x15d   :  { %v342_v58 = vadd.f32 %v334_v54, %v183_v50 }
 0x15f   :  { %350 = vst [vmem:[#allocation11 + $0x30] sm:$0xff] %v342_v58  ;;  %v422_v1 = vmul.f32 %v342_v58, %v342_v58  ;;  %v408_v11 = vadd.f32 %v407_v8, %v342_v58 }
 0x160   :  { %v325_v63 = vpop.f32.mrf.mxu3 }
 0x161   :  { %v326_v5 = vadd.f32 %v843_v4, %v325_v63  ;;  %v429_v13 = vadd.f32 %v428_v10, %v422_v1 }
 0x163   :  { %v335_v9 = vmax.f32 %v326_v5, 0.0 }
 0x165   :  { %v343_v12 = vadd.f32 %v335_v9, %v184_v6 }
 0x167   :  { %351 = vst [vmem:[#allocation11 + $0x38] sm:$0xff] %v343_v12  ;;  %v409_v14 = vadd.f32 %v408_v11, %v343_v12  ;;  %v423_v4 = vmul.f32 %v343_v12, %v343_v12 }
 0x168   :  { %452 = dma.vmem_to_hbm [thread:$0]  %s445_s6, 1024, %s447_s11, [#allocation4], %s707_s13, %s707_s13, %s708_s14  }
 0x169   :  { %v410_v15 = vrot.slane %v409_v14, 4  ;;  %v430_v16 = vadd.f32 %v429_v13, %v423_v4 }
 0x16b   :  { %v411_v17 = vadd.f32 %v410_v15, %v409_v14  ;;  %v431_v18 = vrot.slane %v430_v16, 4 }
 0x16d   :  { %v412_v19 = vrot.slane %v411_v17, 2  ;;  %v432_v20 = vadd.f32 %v431_v18, %v430_v16 }
 0x16f   :  { %v413_v21 = vadd.f32 %v412_v19, %v411_v17  ;;  %v433_v22 = vrot.slane %v432_v20, 2 }
 0x171   :  { %v414_v23 = vrot.slane %v413_v21, 1  ;;  %v434_v24 = vadd.f32 %v433_v22, %v432_v20 }
 0x173   :  { %v435_v25 = vrot.slane %v434_v24, 1  ;;  %v415_v26 = vadd.f32 %v414_v23, %v413_v21 }
 0x175   :  { %v436_v27 = vadd.f32 %v435_v25, %v434_v24 }
 0x177   :  { %v438_v28 = vsel %vm437_vm1, %v415_v26, %v436_v27 }
 0x178   :  { %439 = vst [vmem:[#allocation12] sm:$0x3] %v438_v28 }
 0x179   :  { %463 = dma.vmem_to_hbm [thread:$0]  %s459_s12, 32, %s461_s17, [#allocation13]  }
 0x17a   :  { %702 = dma.done.wait [#allocation4], 1024  }
 0x17b   :  { %703 = vsyncadd [#allocation4], 4294966272 }
 0x17c   :  { %704 = dma.done.wait [#allocation13], 32  }
 0x17d   :  { %705 = vsyncadd [#allocation13], 4294967264 }
 0x17e   :  { %472 = vsyncpa [#allocation3], 1 }
 0x17f   :  { %473 = vsyncpa [#allocation6], 1 }
 0x180   :  { %474 = vsyncpa [#allocation9], 1 }
 0x181   :  { %475 = vsyncpa [#allocation4], 1 }
 0x182   :  { %476 = vsyncpa [#allocation13], 1 }

</bundles_post_ra>
